<compile_context>
chip_gen: v5e
topology: v5e:2x2
jax: 0.10.0
libtpu: 0.0.40
codegen_flags: <defaults>
</compile_context>

<pallas_src>
import functools
import math

import jax
import jax.numpy as jnp
from jax import lax
from jax.experimental import pallas as pl
from jax.experimental.pallas import tpu as pltpu

HIDDEN = 256
LOG2PI = math.log(2.0 * math.pi)


def _round_up(x, m):
    return (x + m - 1) // m * m


def _choose_tile(batch):
    """Pick (batch tile TB, padded batch Bp).

    The batch lives on the lane axis, so TB must be a multiple of 128 (or equal
    the full padded batch). Grid has >= 2 steps whenever Bp > 128 so the
    "parallel" annotation actually uses both v7x TensorCores; large batches get
    bigger tiles to amortize the per-grid-step pipeline overhead.
    """
    bp = _round_up(max(batch, 1), 128)
    if bp <= 128:
        return bp, bp                      # single step; tiny batch = overhead-bound
    if bp <= 512:
        tb = 128                           # >= 2 steps -> both TCs busy
    elif bp <= 2048:
        tb = 256
    else:
        tb = 512
    return tb, _round_up(bp, tb)


# ---------------------------------------------------------------------------
# Kernels (everything is computed transposed: activations are (features, TB))
# ---------------------------------------------------------------------------
def _trunk_t(x_t, w1_ref, b1_ref, w2_ref, b2_ref):
    """Two ReLU layers, transposed: bf16 MXU matmuls with f32 accumulation."""
    bf16 = jnp.bfloat16
    y1 = jnp.maximum(
        jnp.dot(w1_ref[...], x_t.astype(bf16),
                preferred_element_type=jnp.float32) + b1_ref[...], 0.0)
    y2 = jnp.maximum(
        jnp.dot(w2_ref[...], y1.astype(bf16),
                preferred_element_type=jnp.float32) + b2_ref[...], 0.0)
    return y2                                            # (HIDDEN, TB) f32


def _sample_kernel(x_ref, eps_ref, w1_ref, b1_ref, w2_ref, b2_ref,
                   wh_ref, bh_ref, *out_refs, act_dim, a_sub, compute_logprob):
    """Stochastic path: fused (mu | log_sigma) head, rsample, tanh, log-prob."""
    y2 = _trunk_t(x_ref[...], w1_ref, b1_ref, w2_ref, b2_ref)

    # Fused head: (2*a_sub, HIDDEN) @ (HIDDEN, TB) -> mu rows | log_sigma rows.
    head = (jnp.dot(wh_ref[...], y2.astype(jnp.bfloat16),
                    preferred_element_type=jnp.float32) + bh_ref[...])
    mu = head[:a_sub]                                    # (a_sub, TB)
    log_sigma = jnp.clip(head[a_sub:], -20.0, 2.0)
    sigma = jnp.exp(log_sigma)

    eps = eps_ref[...]                                   # (a_sub, TB), lane-dense
    x_t = mu + sigma * eps                               # Normal(mu, sigma).rsample()
    action = jnp.tanh(x_t)
    out_refs[0][...] = action                            # lane-dense store

    if compute_logprob:
        row = lax.broadcasted_iota(jnp.int32, action.shape, 0)
        valid = row < act_dim                            # mask padded action rows
        # Normal log-prob terms (constant -0.5*A*log(2*pi) hoisted out of the
        # sum) plus the tanh change-of-variables correction.
        lp_terms = jnp.where(valid, -0.5 * eps * eps - log_sigma, 0.0)
        corr_terms = jnp.where(valid,
                               jnp.log(1.0 - action * action + 1e-6), 0.0)
        lp = (jnp.sum(lp_terms - corr_terms, axis=0, keepdims=True)
              - 0.5 * act_dim * LOG2PI)                  # (1, TB)
        out_refs[1][...] = lp


def _det_kernel(x_ref, w1_ref, b1_ref, w2_ref, b2_ref, wmu_ref, bmu_ref,
                act_ref):
    """Deterministic path: only the mu head, action = tanh(mu)."""
    y2 = _trunk_t(x_ref[...], w1_ref, b1_ref, w2_ref, b2_ref)
    mu = (jnp.dot(wmu_ref[...], y2.astype(jnp.bfloat16),
                  preferred_element_type=jnp.float32) + bmu_ref[...])
    act_ref[...] = jnp.tanh(mu)


# ---------------------------------------------------------------------------
# One-time parameter preparation (hoisted out of the hot path)
# ---------------------------------------------------------------------------
def prepare_params(params):
    """Transpose / pad / fuse / bf16-cast the weights ONCE; reuse per call."""
    obs, hidden = params["w1"].shape
    act = params["w_mu"].shape[1]
    a_sub = _round_up(act, 8)                 # sublane-padded action dim

    def w_t(w):                                # (in, out) -> (out, in) bf16
        return jnp.asarray(w, jnp.float32).T.astype(jnp.bfloat16)

    def b_col(b, rows):                        # -> (rows, 1) f32, zero padded
        b = jnp.asarray(b, jnp.float32).reshape(-1)
        return jnp.pad(b, (0, rows - b.shape[0]))[:, None]

    def head_w(w):                             # (HIDDEN, act) -> (a_sub, HIDDEN) bf16
        wt = jnp.asarray(w, jnp.float32).T
        return jnp.pad(wt, ((0, a_sub - act), (0, 0))).astype(jnp.bfloat16)

    wh = jnp.concatenate([head_w(params["w_mu"]), head_w(params["w_ls"])],
                         axis=0)                           # (2*a_sub, HIDDEN)
    bh = jnp.concatenate([b_col(params["b_mu"], a_sub),
                          b_col(params["b_ls"], a_sub)], axis=0)
    return dict(
        obs=obs, act=act, a_sub=a_sub, hidden=hidden,
        w1=w_t(params["w1"]), b1=b_col(params["b1"], hidden),
        w2=w_t(params["w2"]), b2=b_col(params["b2"], hidden),
        wh=wh, bh=bh,
        w_mu=head_w(params["w_mu"]), b_mu=b_col(params["b_mu"], a_sub),
    )


# ---------------------------------------------------------------------------
# Forward wrapper
# ---------------------------------------------------------------------------
def pi_fc_forward(prepared, x, eps=None, deterministic=False,
                  with_logprob=False):
    """Mirrors Pi_FC.forward(x, deterministic, with_logprob).

    `prepared` comes from prepare_params(). `eps` is the standard-normal noise
    used by rsample, shape (B, action_size); required unless deterministic.
    Returns (action, log_prob); log_prob is None exactly when the PyTorch
    module returns None.
    """
    obs, act, a_sub = prepared["obs"], prepared["act"], prepared["a_sub"]
    B = x.shape[0]
    TB, Bp = _choose_tile(B)
    grid = (Bp // TB,)

    # Batch on the lane axis: x is fed transposed, (obs, Bp).
    x_t = jnp.pad(jnp.asarray(x, jnp.float32).T, ((0, 0), (0, Bp - B)))

    def col_spec(rows):
        return pl.BlockSpec((rows, TB), lambda i: (0, i))

    def full_spec(arr):
        # Constant block index -> fetched once, VMEM-resident across the grid.
        return pl.BlockSpec(arr.shape, lambda i: (0, 0))

    cparams = pltpu.CompilerParams(
        dimension_semantics=("parallel",))    # batch tiles shard across TCs (v7x)

    w1, b1 = prepared["w1"], prepared["b1"]
    w2, b2 = prepared["w2"], prepared["b2"]

    if deterministic:
        wmu, bmu = prepared["w_mu"], prepared["b_mu"]
        act_t = pl.pallas_call(
            _det_kernel,
            out_shape=jax.ShapeDtypeStruct((a_sub, Bp), jnp.float32),
            grid=grid,
            in_specs=[col_spec(obs),
                      full_spec(w1), full_spec(b1),
                      full_spec(w2), full_spec(b2),
                      full_spec(wmu), full_spec(bmu)],
            out_specs=col_spec(a_sub),
            compiler_params=cparams,
        )(x_t, w1, b1, w2, b2, wmu, bmu)
        return act_t[:act, :B].T, None

    if eps is None:
        raise ValueError("eps (standard-normal noise of shape (B, action_size)) "
                         "is required when deterministic=False")
    # Lane-dense, transposed noise: (a_sub, Bp). Padded rows/cols are zero.
    eps_t = jnp.pad(jnp.asarray(eps, jnp.float32).T,
                    ((0, a_sub - act), (0, Bp - B)))

    wh, bh = prepared["wh"], prepared["bh"]
    kernel = functools.partial(_sample_kernel, act_dim=act, a_sub=a_sub,
                               compute_logprob=with_logprob)
    out_shapes = [jax.ShapeDtypeStruct((a_sub, Bp), jnp.float32)]
    out_specs = [col_spec(a_sub)]
    if with_logprob:
        out_shapes.append(jax.ShapeDtypeStruct((1, Bp), jnp.float32))
        out_specs.append(pl.BlockSpec((1, TB), lambda i: (0, i)))

    outs = pl.pallas_call(
        kernel,
        out_shape=tuple(out_shapes),
        grid=grid,
        in_specs=[col_spec(obs), col_spec(a_sub),
                  full_spec(w1), full_spec(b1),
                  full_spec(w2), full_spec(b2),
                  full_spec(wh), full_spec(bh)],
        out_specs=tuple(out_specs),
        compiler_params=cparams,
    )(x_t, eps_t, w1, b1, w2, b2, wh, bh)

    action = outs[0][:act, :B].T
    log_prob = outs[1][:, :B].T if with_logprob else None
    return action, log_prob


# ---------------------------------------------------------------------------
# Params / reference
# ---------------------------------------------------------------------------
def init_params(key, obs_size, action_size):
    """PyTorch-Linear-style init: U(-1/sqrt(fan_in), 1/sqrt(fan_in))."""
    def linear(k, fan_in, fan_out):
        kw, kb = jax.random.split(k)
        bound = 1.0 / math.sqrt(fan_in)
        w = jax.random.uniform(kw, (fan_in, fan_out), jnp.float32, -bound, bound)
        b = jax.random.uniform(kb, (1, fan_out), jnp.float32, -bound, bound)
        return w, b

    k1, k2, k3, k4 = jax.random.split(key, 4)
    w1, b1 = linear(k1, obs_size, HIDDEN)
    w2, b2 = linear(k2, HIDDEN, HIDDEN)
    wmu, bmu = linear(k3, HIDDEN, action_size)
    wls, bls = linear(k4, HIDDEN, action_size)
    return dict(w1=w1, b1=b1, w2=w2, b2=b2,
                w_mu=wmu, b_mu=bmu, w_ls=wls, b_ls=bls)


def _reference_forward(params, x, eps, deterministic=False, with_logprob=False):
    """Pure-JAX reference (same bf16-weight / f32-accumulate recipe)."""
    bf16, f32 = jnp.bfloat16, jnp.float32

    def lin(v, w, b):
        return jnp.dot(v.astype(bf16), w.astype(bf16),
                       preferred_element_type=f32) + b

    y1 = jax.nn.relu(lin(x, params["w1"], params["b1"]))
    y2 = jax.nn.relu(lin(y1, params["w2"], params["b2"]))
    mu = lin(y2, params["w_mu"], params["b_mu"])
    if deterministic:
        return jnp.tanh(mu), None
    log_sigma = jnp.clip(lin(y2, params["w_ls"], params["b_ls"]), -20.0, 2.0)
    sigma = jnp.exp(log_sigma)
    x_t = mu + sigma * eps
    action = jnp.tanh(x_t)
    log_prob = None
    if with_logprob:
        lp_u = jnp.sum(-0.5 * eps ** 2 - log_sigma - 0.5 * LOG2PI,
                       axis=-1, keepdims=True)
        log_prob = lp_u - jnp.sum(jnp.log(1.0 - action ** 2 + 1e-6),
                                  axis=-1, keepdims=True)
    return action, log_prob


if __name__ == "__main__":
    B, OBS, ACT = 8, 16, 8

    key = jax.random.PRNGKey(0)
    k_param, k_x, k_eps = jax.random.split(key, 3)

    params = init_params(k_param, OBS, ACT)
    prepared = prepare_params(params)          # one-time prep, out of hot path
    x = jax.random.normal(k_x, (B, OBS), jnp.float32)
    eps = jax.random.normal(k_eps, (B, ACT), jnp.float32)
    # TODO(synk): eps could instead be drawn in-kernel with pltpu.prng_seed /
    # pltpu.prng_random_bits to drop the input entirely; kept external so the
    # kernel is bit-comparable to a pure-JAX reference with the same noise.

    # Stochastic path with log-prob (full hot path).
    action, log_prob = pi_fc_forward(prepared, x, eps,
                                     deterministic=False, with_logprob=True)
    jax.block_until_ready((action, log_prob))

    # Stochastic path without log-prob (specialized kernel, log_prob is None).
    samp_action, samp_lp = pi_fc_forward(prepared, x, eps,
                                         deterministic=False, with_logprob=False)
    jax.block_until_ready(samp_action)
    assert samp_lp is None

    # Deterministic path (action = tanh(mu), log_prob is None).
    det_action, det_lp = pi_fc_forward(prepared, x, deterministic=True)
    jax.block_until_ready(det_action)
    assert det_lp is None

    # Check against pure-JAX reference (bf16-weight tolerances).
    ref_action, ref_lp = _reference_forward(params, x, eps,
                                            deterministic=False,
                                            with_logprob=True)
    ref_det, _ = _reference_forward(params, x, eps, deterministic=True)

    assert action.shape == (B, ACT) and log_prob.shape == (B, 1)
    assert jnp.allclose(action, ref_action, atol=2e-3, rtol=1e-3)
    assert jnp.allclose(samp_action, ref_action, atol=2e-3, rtol=1e-3)
    assert jnp.allclose(det_action, ref_det, atol=2e-3, rtol=1e-3)
    assert jnp.allclose(log_prob, ref_lp, atol=2e-2, rtol=1e-2)

    print("KERNEL_OK")
</pallas_src>

<mosaic_0001>
module attributes {stable_mosaic.version = 11 : i64} {
  func.func @_sample_kernel(%arg0: i32, %arg1: memref<16x128xf32, #tpu.memory_space<vmem>>, %arg2: memref<8x128xf32, #tpu.memory_space<vmem>>, %arg3: memref<256x16xbf16, #tpu.memory_space<vmem>>, %arg4: memref<256x1xf32, #tpu.memory_space<vmem>>, %arg5: memref<256x256xbf16, #tpu.memory_space<vmem>>, %arg6: memref<256x1xf32, #tpu.memory_space<vmem>>, %arg7: memref<16x256xbf16, #tpu.memory_space<vmem>>, %arg8: memref<16x1xf32, #tpu.memory_space<vmem>>, %arg9: memref<8x128xf32, #tpu.memory_space<vmem>>, %arg10: memref<1x128xf32, #tpu.memory_space<vmem>>) attributes {dimension_semantics = [#tpu.dimension_semantics<parallel>], iteration_bounds = array<i64: 1>, scalar_prefetch = 0 : i64, scratch_operands = 0 : i64, tpu.core_type = #tpu.core_type<tc>, window_params = [{transform_indices = @transform_0, window_bounds = array<i64: 16, 128>}, {transform_indices = @transform_1, window_bounds = array<i64: 8, 128>}, {pipeline_mode = #tpu.pipeline_mode<synchronous>, transform_indices = @transform_2, window_bounds = array<i64: 256, 16>}, {pipeline_mode = #tpu.pipeline_mode<synchronous>, transform_indices = @transform_3, window_bounds = array<i64: 256, 1>}, {pipeline_mode = #tpu.pipeline_mode<synchronous>, transform_indices = @transform_4, window_bounds = array<i64: 256, 256>}, {pipeline_mode = #tpu.pipeline_mode<synchronous>, transform_indices = @transform_5, window_bounds = array<i64: 256, 1>}, {pipeline_mode = #tpu.pipeline_mode<synchronous>, transform_indices = @transform_6, window_bounds = array<i64: 16, 256>}, {pipeline_mode = #tpu.pipeline_mode<synchronous>, transform_indices = @transform_7, window_bounds = array<i64: 16, 1>}, {transform_indices = @transform_8, window_bounds = array<i64: 8, 128>}, {transform_indices = @transform_9, window_bounds = array<i64: 1, 128>}]} {
    %c0 = arith.constant 0 : index
    %c0_0 = arith.constant 0 : index
    %0 = vector.load %arg1[%c0, %c0_0] : memref<16x128xf32, #tpu.memory_space<vmem>>, vector<16x128xf32>
    %c0_1 = arith.constant 0 : index
    %c0_2 = arith.constant 0 : index
    %1 = vector.load %arg3[%c0_1, %c0_2] : memref<256x16xbf16, #tpu.memory_space<vmem>>, vector<256x16xbf16>
    %2 = arith.truncf %0 : vector<16x128xf32> to vector<16x128xbf16>
    %cst = arith.constant dense<0.000000e+00> : vector<256x128xf32>
    %3 = tpu.matmul %1, %2, %cst {dimension_numbers = #tpu.dot_dimension_numbers<[1], [0], [0], [1], [0, 0, 1, 1], [], []>} : vector<256x16xbf16>, vector<16x128xbf16>, vector<256x128xf32> -> vector<256x128xf32>
    %c0_3 = arith.constant 0 : index
    %c0_4 = arith.constant 0 : index
    %4 = vector.load %arg4[%c0_3, %c0_4] : memref<256x1xf32, #tpu.memory_space<vmem>>, vector<256x1xf32>
    %5 = vector.broadcast %4 : vector<256x1xf32> to vector<256x128xf32>
    %6 = arith.addf %3, %5 : vector<256x128xf32>
    %cst_5 = arith.constant 0.000000e+00 : f32
    %7 = vector.broadcast %cst_5 : f32 to vector<256x128xf32>
    %8 = arith.maximumf %6, %7 : vector<256x128xf32>
    %c0_6 = arith.constant 0 : index
    %c0_7 = arith.constant 0 : index
    %9 = vector.load %arg5[%c0_6, %c0_7] : memref<256x256xbf16, #tpu.memory_space<vmem>>, vector<256x256xbf16>
    %10 = arith.truncf %8 : vector<256x128xf32> to vector<256x128xbf16>
    %cst_8 = arith.constant dense<0.000000e+00> : vector<256x128xf32>
    %11 = tpu.matmul %9, %10, %cst_8 {dimension_numbers = #tpu.dot_dimension_numbers<[1], [0], [0], [1], [0, 0, 1, 1], [], []>} : vector<256x256xbf16>, vector<256x128xbf16>, vector<256x128xf32> -> vector<256x128xf32>
    %c0_9 = arith.constant 0 : index
    %c0_10 = arith.constant 0 : index
    %12 = vector.load %arg6[%c0_9, %c0_10] : memref<256x1xf32, #tpu.memory_space<vmem>>, vector<256x1xf32>
    %13 = vector.broadcast %12 : vector<256x1xf32> to vector<256x128xf32>
    %14 = arith.addf %11, %13 : vector<256x128xf32>
    %cst_11 = arith.constant 0.000000e+00 : f32
    %15 = vector.broadcast %cst_11 : f32 to vector<256x128xf32>
    %16 = arith.maximumf %14, %15 : vector<256x128xf32>
    %c0_12 = arith.constant 0 : index
    %c0_13 = arith.constant 0 : index
    %17 = vector.load %arg7[%c0_12, %c0_13] : memref<16x256xbf16, #tpu.memory_space<vmem>>, vector<16x256xbf16>
    %18 = arith.truncf %16 : vector<256x128xf32> to vector<256x128xbf16>
    %cst_14 = arith.constant dense<0.000000e+00> : vector<16x128xf32>
    %19 = tpu.matmul %17, %18, %cst_14 {dimension_numbers = #tpu.dot_dimension_numbers<[1], [0], [0], [1], [0, 0, 1, 1], [], []>} : vector<16x256xbf16>, vector<256x128xbf16>, vector<16x128xf32> -> vector<16x128xf32>
    %c0_15 = arith.constant 0 : index
    %c0_16 = arith.constant 0 : index
    %20 = vector.load %arg8[%c0_15, %c0_16] : memref<16x1xf32, #tpu.memory_space<vmem>>, vector<16x1xf32>
    %21 = vector.broadcast %20 : vector<16x1xf32> to vector<16x128xf32>
    %22 = arith.addf %19, %21 : vector<16x128xf32>
    %23 = vector.extract_strided_slice %22 {offsets = [0, 0], sizes = [8, 128], strides = [1, 1]} : vector<16x128xf32> to vector<8x128xf32>
    %24 = vector.extract_strided_slice %22 {offsets = [8, 0], sizes = [8, 128], strides = [1, 1]} : vector<16x128xf32> to vector<8x128xf32>
    %cst_17 = arith.constant -2.000000e+01 : f32
    %cst_18 = arith.constant 2.000000e+00 : f32
    %25 = vector.broadcast %cst_17 : f32 to vector<8x128xf32>
    %26 = arith.maximumf %25, %24 : vector<8x128xf32>
    %27 = vector.broadcast %cst_18 : f32 to vector<8x128xf32>
    %28 = arith.minimumf %27, %26 : vector<8x128xf32>
    %29 = math.exp %28 : vector<8x128xf32>
    %c0_19 = arith.constant 0 : index
    %c0_20 = arith.constant 0 : index
    %30 = vector.load %arg2[%c0_19, %c0_20] : memref<8x128xf32, #tpu.memory_space<vmem>>, vector<8x128xf32>
    %31 = arith.mulf %29, %30 : vector<8x128xf32>
    %32 = arith.addf %23, %31 : vector<8x128xf32>
    %33 = math.tanh %32 : vector<8x128xf32>
    %c0_21 = arith.constant 0 : index
    %c0_22 = arith.constant 0 : index
    %34 = vector.load %arg9[%c0_21, %c0_22] : memref<8x128xf32, #tpu.memory_space<vmem>>, vector<8x128xf32>
    tpu.vector_store %arg9[%c0_21, %c0_22], %33 {strides = array<i32>} : memref<8x128xf32, #tpu.memory_space<vmem>>, vector<8x128xf32>,
    %35 = tpu.iota {dimensions = array<i32: 0>} : vector<8x128xi32>
    %c8_i32 = arith.constant 8 : i32
    %36 = vector.broadcast %c8_i32 : i32 to vector<8x128xi32>
    %37 = arith.cmpi slt, %35, %36 : vector<8x128xi32>
    %cst_23 = arith.constant -5.000000e-01 : f32
    %38 = vector.broadcast %cst_23 : f32 to vector<8x128xf32>
    %39 = arith.mulf %38, %30 : vector<8x128xf32>
    %40 = arith.mulf %39, %30 : vector<8x128xf32>
    %41 = arith.subf %40, %28 : vector<8x128xf32>
    %cst_24 = arith.constant 0.000000e+00 : f32
    %42 = vector.broadcast %cst_24 : f32 to vector<8x128xf32>
    %43 = arith.select %37, %41, %42 : vector<8x128xi1>, vector<8x128xf32>
    %44 = arith.mulf %33, %33 : vector<8x128xf32>
    %cst_25 = arith.constant 1.000000e+00 : f32
    %45 = vector.broadcast %cst_25 : f32 to vector<8x128xf32>
    %46 = arith.subf %45, %44 : vector<8x128xf32>
    %cst_26 = arith.constant 9.99999997E-7 : f32
    %47 = vector.broadcast %cst_26 : f32 to vector<8x128xf32>
    %48 = arith.addf %46, %47 : vector<8x128xf32>
    %49 = math.log %48 : vector<8x128xf32>
    %cst_27 = arith.constant 0.000000e+00 : f32
    %50 = vector.broadcast %cst_27 : f32 to vector<8x128xf32>
    %51 = arith.select %37, %49, %50 : vector<8x128xi1>, vector<8x128xf32>
    %52 = arith.subf %43, %51 : vector<8x128xf32>
    %cst_28 = arith.constant dense<0.000000e+00> : vector<128xf32>
    %53 = vector.multi_reduction <add>, %52, %cst_28 [0] : vector<8x128xf32> to vector<128xf32>
    %54 = vector.shape_cast %53 : vector<128xf32> to vector<1x128xf32>
    %cst_29 = arith.constant 7.35150814 : f32
    %55 = vector.broadcast %cst_29 : f32 to vector<1x128xf32>
    %56 = arith.subf %54, %55 : vector<1x128xf32>
    %c0_30 = arith.constant 0 : index
    %c0_31 = arith.constant 0 : index
    %57 = vector.load %arg10[%c0_30, %c0_31] : memref<1x128xf32, #tpu.memory_space<vmem>>, vector<1x128xf32>
    tpu.vector_store %arg10[%c0_30, %c0_31], %56 {strides = array<i32>} : memref<1x128xf32, #tpu.memory_space<vmem>>, vector<1x128xf32>,
    return
  }
  func.func @transform_0(%arg0: i32) -> (i32, i32) {
    %c0_i32 = arith.constant 0 : i32
    %c0_i32_0 = arith.constant 0 : i32
    return %c0_i32, %arg0 : i32, i32
  }
  func.func @transform_1(%arg0: i32) -> (i32, i32) {
    %c0_i32 = arith.constant 0 : i32
    %c0_i32_0 = arith.constant 0 : i32
    return %c0_i32, %arg0 : i32, i32
  }
  func.func @transform_2(%arg0: i32) -> (i32, i32) {
    %c0_i32 = arith.constant 0 : i32
    %c0_i32_0 = arith.constant 0 : i32
    %c0_i32_1 = arith.constant 0 : i32
    return %c0_i32, %c0_i32_0 : i32, i32
  }
  func.func @transform_3(%arg0: i32) -> (i32, i32) {
    %c0_i32 = arith.constant 0 : i32
    %c0_i32_0 = arith.constant 0 : i32
    %c0_i32_1 = arith.constant 0 : i32
    return %c0_i32, %c0_i32_0 : i32, i32
  }
  func.func @transform_4(%arg0: i32) -> (i32, i32) {
    %c0_i32 = arith.constant 0 : i32
    %c0_i32_0 = arith.constant 0 : i32
    %c0_i32_1 = arith.constant 0 : i32
    return %c0_i32, %c0_i32_0 : i32, i32
  }
  func.func @transform_5(%arg0: i32) -> (i32, i32) {
    %c0_i32 = arith.constant 0 : i32
    %c0_i32_0 = arith.constant 0 : i32
    %c0_i32_1 = arith.constant 0 : i32
    return %c0_i32, %c0_i32_0 : i32, i32
  }
  func.func @transform_6(%arg0: i32) -> (i32, i32) {
    %c0_i32 = arith.constant 0 : i32
    %c0_i32_0 = arith.constant 0 : i32
    %c0_i32_1 = arith.constant 0 : i32
    return %c0_i32, %c0_i32_0 : i32, i32
  }
  func.func @transform_7(%arg0: i32) -> (i32, i32) {
    %c0_i32 = arith.constant 0 : i32
    %c0_i32_0 = arith.constant 0 : i32
    %c0_i32_1 = arith.constant 0 : i32
    return %c0_i32, %c0_i32_0 : i32, i32
  }
  func.func @transform_8(%arg0: i32) -> (i32, i32) {
    %c0_i32 = arith.constant 0 : i32
    %c0_i32_0 = arith.constant 0 : i32
    return %c0_i32, %arg0 : i32, i32
  }
  func.func @transform_9(%arg0: i32) -> (i32, i32) {
    %c0_i32 = arith.constant 0 : i32
    %c0_i32_0 = arith.constant 0 : i32
    return %c0_i32, %arg0 : i32, i32
  }
}

</mosaic_0001>

<bundles_post_ra>
// kernel: tpu_custom_call.1
= control target key start
LH: loop header
LB: loop body
LE: loop exit
PB: predicated region body
PF: predicated region fallthrough
CT: control target
= control target key end

     0   :  { %15 = vsyncpa [#allocation3], 0  ;;  %v1600_v3 = vmov 0   ;;  %vm341_vm0 = vcmask 130048   ;;  %s2317_s0 = inlined_call_operand.vmem [shape: f32[16,128], index: 0, kind: input, shape index: {}]   ;;  %s2318_s1 = inlined_call_operand.vmem [shape: f32[8,128], index: 1, kind: input, shape index: {}]   ;;  %s2319_s2 = inlined_call_operand.vmem [shape: bf16[256,16], index: 2, kind: input, shape index: {}]   ;;  %s2320_s3 = inlined_call_operand.vmem [shape: f32[256,1], index: 3, kind: input, shape index: {}]   ;;  %s2321_s4 = inlined_call_operand.vmem [shape: bf16[256,256], index: 4, kind: input, shape index: {}]   ;;  %s2322_s5 = inlined_call_operand.vmem [shape: f32[256,1], index: 5, kind: input, shape index: {}]   ;;  %s2323_s6 = inlined_call_operand.vmem [shape: bf16[16,256], index: 6, kind: input, shape index: {}]   ;;  %s2324_s7 = inlined_call_operand.vmem [shape: f32[16,1], index: 7, kind: input, shape index: {}]   ;;  %s2325_s8 = inlined_call_operand.hbm [shape: f32[8,128], index: 8, kind: output, shape index: {0}]   ;;  %s2326_s9 = inlined_call_operand.hbm [shape: f32[1,128], index: 9, kind: output, shape index: {1}]  }
   0x1   :  { %v99_v0 = vld [vmem:[%s2320_s3 + $0xf0] sm:$0xff]  ;;  %v97_v1 = vld [vmem:[%s2320_s3 + $0xe0] sm:$0xff]  ;;  %1541 = vset.pattern.permute.xlu2 %v1600_v3  ;;  %1540 = vset.pattern.permute.xlu1 %v1600_v3  ;;  %v35_v5 = vld [vmem:[%s2317_s0 + $0x8] sm:$0xff] }
   0x2   :  { %v83_v2 = vld [vmem:[%s2320_s3 + $0x70] sm:$0xff]  ;;  %v34_v4 = vld [vmem:[%s2317_s0] sm:$0xff]  ;;  %1539 = vset.pattern.permute.xlu0 %v1600_v3  ;;  %243 = vperm.xlu2 %1541, %v97_v1  }
   0x3   :  { %v68_v6 = vpack.c.bf16 %v35_v5, %v34_v4  ;;  %253 = vperm.xlu0 %1539, %v99_v0   ;;  %173 = vperm.xlu1 %1540, %v83_v2   ;;  %v1469_v7 = vld [vmem:[%s2319_s2] sm:$0xff] }
   0x5   :  { %397 = vmatpush.bf16.msra.mxu0 %v68_v6  ;;  %1519 = vmatpush.bf16.msra.mxu3 %v68_v6 }
   0x6   :  { %16 = vsyncpa [#allocation5], 0  ;;  %v98_v8 = vld [vmem:[%s2320_s3 + $0xe8] sm:$0xff]  ;;  %v100_v9 = vld [vmem:[%s2320_s3 + $0xf8] sm:$0xff]  ;;  %s1601_s22 = smov [#allocation2]   ;;  %s1227_s25 = sshll.u32 %s2325_s8, 4  ;;  %s1228_s25 = int_to_ptr.hbm [resolvable:$true] %s1227_s25 }
   0x7   :  { %v84_v10 = vld [vmem:[%s2320_s3 + $0x78] sm:$0xff]  ;;  %v95_v11 = vld [vmem:[%s2320_s3 + $0xd0] sm:$0xff]  ;;  %v82_v12 = vld [vmem:[%s2320_s3 + $0x68] sm:$0xff]  ;;  %s1225_s0 = sshll.u32 %s1601_s22, 4  ;;  %s1226_s0 = int_to_ptr.vmem [resolvable:$true] %s1225_s0 }
   0x8   :  { %1316 = vmatmul.msk.bf16.vlgmr.msra.gmra.mxu0 %vm341_vm0, %v1469_v7  ;;  %v81_v13 = vld [vmem:[%s2320_s3 + $0x60] sm:$0xff]  ;;  %v1470_v14 = vld [vmem:[%s2319_s2 + $0x8] sm:$0xff]  ;;  %v80_v15 = vld [vmem:[%s2320_s3 + $0x58] sm:$0xff] }
   0x9   :  { %v96_v16 = vld [vmem:[%s2320_s3 + $0xd8] sm:$0xff]  ;;  %v79_v17 = vld [vmem:[%s2320_s3 + $0x50] sm:$0xff]  ;;  %v77_v18 = vld [vmem:[%s2320_s3 + $0x40] sm:$0xff] }
   0xa   :  { %248 = vperm.xlu2 %1541, %v98_v8   ;;  %v93_v19 = vld [vmem:[%s2320_s3 + $0xc0] sm:$0xff]  ;;  %v94_v20 = vld [vmem:[%s2320_s3 + $0xc8] sm:$0xff]  ;;  %v1471_v21 = vld [vmem:[%s2319_s2 + $0x10] sm:$0xff] }
   0xb   :  { %258 = vperm.xlu0 %1539, %v100_v9   ;;  %178 = vperm.xlu1 %1540, %v84_v10   ;;  %v92_v22 = vld [vmem:[%s2320_s3 + $0xb8] sm:$0xff]  ;;  %v91_v23 = vld [vmem:[%s2320_s3 + $0xb0] sm:$0xff]  ;;  %v78_v24 = vld [vmem:[%s2320_s3 + $0x48] sm:$0xff] }
   0xc   :  { %v89_v25 = vld [vmem:[%s2320_s3 + $0xa0] sm:$0xff]  ;;  %v76_v26 = vld [vmem:[%s2320_s3 + $0x38] sm:$0xff]  ;;  %v75_v27 = vld [vmem:[%s2320_s3 + $0x30] sm:$0xff] }
   0xd   :  { %v1472_v28 = vld [vmem:[%s2319_s2 + $0x18] sm:$0xff]  ;;  %v74_v29 = vld [vmem:[%s2320_s3 + $0x28] sm:$0xff]  ;;  %v73_v31 = vld [vmem:[%s2320_s3 + $0x20] sm:$0xff] }
   0xe   :  { %v90_v30 = vld [vmem:[%s2320_s3 + $0xa8] sm:$0xff]  ;;  %v71_v32 = vld [vmem:[%s2320_s3 + $0x10] sm:$0xff]  ;;  %v88_v34 = vld [vmem:[%s2320_s3 + $0x98] sm:$0xff] }
   0xf   :  { %v87_v33 = vld [vmem:[%s2320_s3 + $0x90] sm:$0xff]  ;;  %v1473_v35 = vld [vmem:[%s2319_s2 + $0x20] sm:$0xff]  ;;  %v72_v37 = vld [vmem:[%s2320_s3 + $0x18] sm:$0xff] }
  0x10   :  { %v85_v36 = vld [vmem:[%s2320_s3 + $0x80] sm:$0xff]  ;;  %v86_v38 = vld [vmem:[%s2320_s3 + $0x88] sm:$0xff]  ;;  %v573_v42 = vld [vmem:[%s2322_s5 + $0x70] sm:$0xff] }
  0x11   :  { %v70_v39 = vld [vmem:[%s2320_s3 + $0x8] sm:$0xff]  ;;  %v69_v40 = vld [vmem:[%s2320_s3] sm:$0xff]  ;;  %v574_v44 = vld [vmem:[%s2322_s5 + $0x78] sm:$0xff]  ;;  %s1238_s3 = sshll.u32 %s2326_s9, 4  ;;  %s1239_s3 = int_to_ptr.hbm [resolvable:$true] %s1238_s3 }
  0x12   :  { %233 = vperm.xlu2 %1541, %v95_v11   ;;  %v1474_v41 = vld [vmem:[%s2319_s2 + $0x28] sm:$0xff]  ;;  %v571_v43 = vld [vmem:[%s2322_s5 + $0x60] sm:$0xff]  ;;  %v570_v46 = vld [vmem:[%s2322_s5 + $0x58] sm:$0xff] }
  0x13   :  { %168 = vperm.xlu1 %1540, %v82_v12   ;;  %163 = vperm.xlu0 %1539, %v81_v13   ;;  %v572_v45 = vld [vmem:[%s2322_s5 + $0x68] sm:$0xff]  ;;  %v569_v47 = vld [vmem:[%s2322_s5 + $0x50] sm:$0xff]  ;;  %v567_v49 = vld [vmem:[%s2322_s5 + $0x40] sm:$0xff] }
  0x14   :  { %v1475_v48 = vld [vmem:[%s2319_s2 + $0x30] sm:$0xff]  ;;  %v568_v53 = vld [vmem:[%s2322_s5 + $0x48] sm:$0xff]  ;;  %v566_v54 = vld [vmem:[%s2322_s5 + $0x38] sm:$0xff] }
  0x15   :  { %v1483_v51 = vld [vmem:[%s2319_s2 + $0x70] sm:$0xff]  ;;  %v590_v56 = vld [vmem:[%s2322_s5 + $0xf8] sm:$0xff]  ;;  %v563_v61 = vld [vmem:[%s2322_s5 + $0x20] sm:$0xff] }
  0x16   :  { %v565_v52 = vld [vmem:[%s2322_s5 + $0x30] sm:$0xff]  ;;  %1330 = vmatmul.msk.bf16.vlgmr.msra.gmra.mxu3 %vm341_vm0, %v1483_v51  ;;  %v1476_v58 = vld [vmem:[%s2319_s2 + $0x38] sm:$0xff]  ;;  %v587_v63 = vld [vmem:[%s2322_s5 + $0xe0] sm:$0xff] }
  0x17   :  { %v589_v57 = vld [vmem:[%s2322_s5 + $0xf0] sm:$0xff]  ;;  %v1484_v62 = vld [vmem:[%s2319_s2 + $0x78] sm:$0xff]  ;;  %v564_v0 = vld [vmem:[%s2322_s5 + $0x28] sm:$0xff] }
  0x18   :  { %1317 = vmatmul.msk.bf16.gmra.mxu0 %vm341_vm0, %v1470_v14  ;;  %v588_v4 = vld [vmem:[%s2322_s5 + $0xe8] sm:$0xff]  ;;  %v562_v5 = vld [vmem:[%s2322_s5 + $0x18] sm:$0xff]  ;;  %v561_v6 = vld [vmem:[%s2322_s5 + $0x10] sm:$0xff] }
  0x19   :  { %v1477_v7 = vld [vmem:[%s2319_s2 + $0x40] sm:$0xff]  ;;  %v585_v12 = vld [vmem:[%s2322_s5 + $0xd0] sm:$0xff]  ;;  %v586_v14 = vld [vmem:[%s2322_s5 + $0xd8] sm:$0xff] }
  0x1a   :  { %158 = vperm.xlu2 %1541, %v80_v15   ;;  %v559_v13 = vld [vmem:[%s2322_s5] sm:$0xff] }
  0x1b   :  { %238 = vperm.xlu0 %1539, %v96_v16   ;;  %153 = vperm.xlu1 %1540, %v79_v17  }
  0x22   :  { %143 = vperm.xlu2 %1541, %v77_v18   ;;  %v560_v18 = vld [vmem:[%s2322_s5 + $0x8] sm:$0xff] }
  0x23   :  { %223 = vperm.xlu0 %1539, %v93_v19   ;;  %228 = vperm.xlu1 %1540, %v94_v20   ;;  %v584_v20 = vld [vmem:[%s2322_s5 + $0xc8] sm:$0xff] }
  0x26   :  { %1331 = vmatmul.msk.bf16.gmra.mxu3 %vm341_vm0, %v1484_v62 }
  0x28   :  { %1318 = vmatmul.msk.bf16.gmra.mxu0 %vm341_vm0, %v1471_v21  ;;  %v583_v21 = vld [vmem:[%s2322_s5 + $0xc0] sm:$0xff] }
  0x2a   :  { %218 = vperm.xlu2 %1541, %v92_v22   ;;  %v1478_v22 = vld [vmem:[%s2319_s2 + $0x48] sm:$0xff] }
  0x2b   :  { %213 = vperm.xlu1 %1540, %v91_v23   ;;  %148 = vperm.xlu0 %1539, %v78_v24  }
  0x32   :  { %203 = vperm.xlu2 %1541, %v89_v25  }
  0x33   :  { %138 = vperm.xlu1 %1540, %v76_v26   ;;  %133 = vperm.xlu0 %1539, %v75_v27   ;;  %v581_v26 = vld [vmem:[%s2322_s5 + $0xb0] sm:$0xff] }
  0x38   :  { %1319 = vmatmul.msk.bf16.gmra.mxu0 %vm341_vm0, %v1472_v28  ;;  %v579_v28 = vld [vmem:[%s2322_s5 + $0xa0] sm:$0xff] }
  0x3a   :  { %128 = vperm.xlu2 %1541, %v74_v29   ;;  %v582_v29 = vld [vmem:[%s2322_s5 + $0xb8] sm:$0xff] }
  0x3b   :  { %208 = vperm.xlu0 %1539, %v90_v30   ;;  %123 = vperm.xlu1 %1540, %v73_v31  }
  0x42   :  { %113 = vperm.xlu2 %1541, %v71_v32  }
  0x43   :  { %193 = vperm.xlu0 %1539, %v87_v33   ;;  %198 = vperm.xlu1 %1540, %v88_v34   ;;  %v580_v33 = vld [vmem:[%s2322_s5 + $0xa8] sm:$0xff]  ;;  %v578_v34 = vld [vmem:[%s2322_s5 + $0x98] sm:$0xff] }
  0x48   :  { %1320 = vmatmul.msk.bf16.gmra.mxu0 %vm341_vm0, %v1473_v35  ;;  %v577_v35 = vld [vmem:[%s2322_s5 + $0x90] sm:$0xff] }
  0x4a   :  { %188 = vperm.xlu2 %1541, %v86_v38  }
  0x4b   :  { %183 = vperm.xlu1 %1540, %v85_v36   ;;  %118 = vperm.xlu0 %1539, %v72_v37   ;;  %v1479_v37 = vld [vmem:[%s2319_s2 + $0x50] sm:$0xff] }
  0x52   :  { %663 = vperm.xlu2 %1541, %v573_v42   ;;  %v1140_v42 = vld [vmem:[%s2324_s7 + $0x8] sm:$0xff] }
  0x53   :  { %108 = vperm.xlu1 %1540, %v70_v39   ;;  %103 = vperm.xlu0 %1539, %v69_v40  }
  0x58   :  { %1321 = vmatmul.msk.bf16.gmra.mxu0 %vm341_vm0, %v1474_v41  ;;  %v575_v41 = vld [vmem:[%s2322_s5 + $0x80] sm:$0xff] }
  0x5a   :  { %658 = vperm.xlu2 %1541, %v572_v45  }
  0x5b   :  { %653 = vperm.xlu1 %1540, %v571_v43   ;;  %668 = vperm.xlu0 %1539, %v574_v44   ;;  %v576_v43 = vld [vmem:[%s2322_s5 + $0x88] sm:$0xff] }
  0x5c   :  { %v1803_v50 = vpop.permute.xlu2 %243 }
  0x62   :  { %633 = vperm.xlu2 %1541, %v567_v49   ;;  %v1139_v49 = vld [vmem:[%s2324_s7] sm:$0xff] }
  0x63   :  { %648 = vperm.xlu1 %1540, %v570_v46   ;;  %643 = vperm.xlu0 %1539, %v569_v47  }
  0x64   :  { %v1819_v55 = vpop.permute.xlu2 %248 }
  0x68   :  { %1322 = vmatmul.msk.bf16.gmra.mxu0 %vm341_vm0, %v1475_v48 }
  0x6a   :  { %628 = vperm.xlu2 %1541, %v566_v54  }
  0x6b   :  { %623 = vperm.xlu1 %1540, %v565_v52   ;;  %638 = vperm.xlu0 %1539, %v568_v53  }
  0x6c   :  { %v1848_v1 = vpop.permute.xlu2 %233 }
  0x72   :  { %613 = vperm.xlu2 %1541, %v563_v61  }
  0x73   :  { %748 = vperm.xlu1 %1540, %v590_v56   ;;  %743 = vperm.xlu0 %1539, %v589_v57   ;;  %v1480_v56 = vld [vmem:[%s2319_s2 + $0x58] sm:$0xff] }
  0x74   :  { %v1866_v8 = vpop.permute.xlu2 %158 }
  0x75   :  { %v1830_v59 = vpop.permute.xlu0 %253  ;;  %v1832_v60 = vpop.permute.xlu1 %173 }
  0x78   :  { %1323 = vmatmul.msk.bf16.gmra.mxu0 %vm341_vm0, %v1476_v58 }
  0x7a   :  { %738 = vperm.xlu2 %1541, %v588_v4  }
  0x7b   :  { %733 = vperm.xlu1 %1540, %v587_v63   ;;  %618 = vperm.xlu0 %1539, %v564_v0  }
  0x7c   :  { %v1893_v19 = vpop.permute.xlu2 %143 }
  0x7d   :  { %v1850_v2 = vpop.permute.xlu0 %258  ;;  %v1852_v3 = vpop.permute.xlu1 %178 }
  0x82   :  { %723 = vperm.xlu2 %1541, %v585_v12  }
  0x83   :  { %608 = vperm.xlu1 %1540, %v562_v5   ;;  %603 = vperm.xlu0 %1539, %v561_v6  }
  0x84   :  { %v1912_v27 = vpop.permute.xlu2 %218 }
  0x85   :  { %v1868_v9 = vpop.f32.mrf.mxu0  ;;  %v1870_v10 = vpop.permute.xlu1 %168 }
  0x86   :  { %v1872_v11 = vpop.permute.xlu0 %163 }
  0x88   :  { %1324 = vmatmul.msk.bf16.gmra.mxu0 %vm341_vm0, %v1477_v7 }
  0x8a   :  { %598 = vperm.xlu2 %1541, %v560_v18  }
  0x8b   :  { %593 = vperm.xlu1 %1540, %v559_v13   ;;  %728 = vperm.xlu0 %1539, %v586_v14  }
  0x8c   :  { %v1933_v36 = vpop.permute.xlu2 %203 }
  0x8d   :  { %v1884_v15 = vpop.f32.mrf.mxu0  ;;  %v1888_v17 = vpop.permute.xlu1 %153 }
  0x8e   :  { %v1886_v16 = vpop.permute.xlu0 %238 }
  0x92   :  { %703 = vperm.xlu2 %1541, %v581_v26   ;;  %v1481_v26 = vld [vmem:[%s2319_s2 + $0x60] sm:$0xff] }
  0x93   :  { %718 = vperm.xlu1 %1540, %v584_v20   ;;  %713 = vperm.xlu0 %1539, %v583_v21  }
  0x94   :  { %v129_v44 = vpop.permute.xlu2 %128 }
  0x95   :  { %v404_v23 = vpop.f32.mrf.mxu0  ;;  %v1906_v25 = vpop.permute.xlu1 %228 }
  0x96   :  { %v1904_v24 = vpop.permute.xlu0 %223 }
  0x98   :  { %1325 = vmatmul.msk.bf16.gmra.mxu0 %vm341_vm0, %v1478_v22 }
  0x9a   :  { %698 = vperm.xlu2 %1541, %v580_v33  }
  0x9b   :  { %693 = vperm.xlu1 %1540, %v579_v28   ;;  %708 = vperm.xlu0 %1539, %v582_v29  }
  0x9c   :  { %v114_v62 = vpop.permute.xlu2 %113 }
  0x9d   :  { %v406_v30 = vpop.f32.mrf.mxu0  ;;  %v1920_v31 = vpop.permute.xlu1 %213  ;;  %v405_v0 = vadd.f32 %v404_v23, %v114_v62 }
  0x9e   :  { %v1922_v32 = vpop.permute.xlu0 %148 }
  0x9f   :  { %v481_v18 = vmax.f32 %v405_v0, 0.0 }
  0xa2   :  { %673 = vperm.xlu2 %1541, %v575_v41  }
  0xa3   :  { %688 = vperm.xlu1 %1540, %v578_v34   ;;  %683 = vperm.xlu0 %1539, %v577_v35  }
  0xa5   :  { %v409_v38 = vpop.f32.mrf.mxu0  ;;  %v139_v39 = vpop.permute.xlu1 %138 }
  0xa6   :  { %v134_v40 = vpop.permute.xlu0 %133 }
  0xa8   :  { %1326 = vmatmul.msk.bf16.gmra.mxu0 %vm341_vm0, %v1479_v37 }
  0xaa   :  { %1143 = vperm.xlu2 %1541, %v1139_v49  }
  0xab   :  { %1148 = vperm.xlu1 %1540, %v1140_v42   ;;  %678 = vperm.xlu0 %1539, %v576_v43  }
  0xad   :  { %v411_v45 = vpop.f32.mrf.mxu0  ;;  %v124_v48 = vpop.permute.xlu1 %123 }
  0xae   :  { %v412_v46 = vadd.f32 %v411_v45, %v129_v44  ;;  %v1948_v47 = vpop.permute.xlu0 %208  ;;  %v410_v51 = vadd.f32 %v409_v38, %v124_v48 }
  0xb0   :  { %v484_v52 = vmax.f32 %v412_v46, 0.0  ;;  %v483_v53 = vmax.f32 %v410_v51, 0.0 }
  0xb2   :  { %v1953_v54 = vpack.c.bf16 %v484_v52, %v483_v53 }
  0xb5   :  { %v414_v57 = vpop.f32.mrf.mxu0  ;;  %v1960_v61 = vpop.permute.xlu1 %198 }
  0xb6   :  { %v1958_v58 = vpop.permute.xlu0 %193  ;;  %v415_v63 = vadd.f32 %v414_v57, %v134_v40 }
  0xb8   :  { %1327 = vmatmul.msk.bf16.gmra.mxu0 %vm341_vm0, %v1480_v56  ;;  %v485_v13 = vmax.f32 %v415_v63, 0.0 }
  0xbd   :  { %v416_v4 = vpop.f32.mrf.mxu0  ;;  %v184_v6 = vpop.permute.xlu1 %183 }
  0xbe   :  { %v417_v5 = vadd.f32 %v416_v4, %v139_v39  ;;  %v119_v7 = vpop.permute.xlu0 %118  ;;  %v1482_v39 = vld [vmem:[%s2319_s2 + $0x68] sm:$0xff] }
  0xbf   :  { %v407_v12 = vadd.f32 %v406_v30, %v119_v7 }
  0xc0   :  { %v486_v14 = vmax.f32 %v417_v5, 0.0 }
  0xc1   :  { %v482_v20 = vmax.f32 %v407_v12, 0.0 }
  0xc2   :  { %v1963_v21 = vpack.c.bf16 %v486_v14, %v485_v13 }
  0xc3   :  { %v1965_v22 = vpack.c.bf16 %v482_v20, %v481_v18 }
  0xc5   :  { %v419_v28 = vpop.f32.mrf.mxu0  ;;  %v109_v29 = vpop.permute.xlu1 %108 }
  0xc6   :  { %v104_v23 = vpop.permute.xlu0 %103  ;;  %v402_v33 = vadd.f32 %v1884_v15, %v109_v29  ;;  %v469_v15 = vpop.f32.mrf.mxu3 }
  0xc7   :  { %v400_v34 = vadd.f32 %v1868_v9, %v104_v23 }
  0xc8   :  { %1328 = vmatmul.msk.bf16.gmra.mxu0 %vm341_vm0, %v1481_v26  ;;  %v480_v30 = vmax.f32 %v402_v33, 0.0 }
  0xc9   :  { %v479_v35 = vmax.f32 %v400_v34, 0.0 }
  0xcb   :  { %v1973_v37 = vpack.c.bf16 %v480_v30, %v479_v35 }
  0xcd   :  { %v421_v38 = vpop.f32.mrf.mxu0 }
  0xce   :  { %v471_v9 = vpop.f32.mrf.mxu3 }
  0xd5   :  { %v424_v40 = vpop.f32.mrf.mxu0 }
  0xd6   :  { %v474_v49 = vpop.f32.mrf.mxu3  ;;  %v425_v5 = vadd.f32 %v424_v40, %v1888_v17 }
  0xd7   :  { %v475_v0 = vadd.f32 %v474_v49, %v1830_v59  ;;  %v420_v59 = vadd.f32 %v419_v28, %v1893_v19 }
  0xd8   :  { %1329 = vmatmul.msk.bf16.gmra.mxu0 %vm341_vm0, %v1482_v39  ;;  %v489_v20 = vmax.f32 %v425_v5, 0.0  ;;  %v1334_v39 = vld [vmem:[%s2321_s4] sm:$0xf] }
  0xd9   :  { %v509_v14 = vmax.f32 %v475_v0, 0.0  ;;  %v487_v34 = vmax.f32 %v420_v59, 0.0 }
  0xdd   :  { %v426_v41 = vpop.f32.mrf.mxu0 }
  0xde   :  { %v427_v57 = vadd.f32 %v426_v41, %v1866_v8  ;;  %v476_v12 = vpop.f32.mrf.mxu3  ;;  %v472_v8 = vadd.f32 %v471_v9, %v1819_v55  ;;  %v1486_v41 = vld [vmem:[%s2321_s4 + $0x4] sm:$0xf0] }
  0xdf   :  { %v477_v18 = vadd.f32 %v476_v12, %v1850_v2 }
  0xe0   :  { %v508_v23 = vmax.f32 %v472_v8, 0.0  ;;  %v1366_v8 = vld [vmem:[%s2321_s4 + $0x40] sm:$0xf] }
  0xe1   :  { %v510_v17 = vmax.f32 %v477_v18, 0.0 }
  0xe3   :  { %v558_v33 = vpack.c.bf16 %v510_v17, %v509_v14  ;;  %v1494_v14 = vld [vmem:[%s2321_s4 + $0x44] sm:$0xf0] }
  0xe4   :  { %v1367_v17 = vor.u32 %v1494_v14, %v1366_v8 }
  0xe5   :  { %v429_v42 = vpop.f32.mrf.mxu0  ;;  %1000 = vmatpush.bf16.msra.mxu2 %v558_v33 }
  0xe6   :  { %v430_v52 = vadd.f32 %v429_v42, %v1872_v11  ;;  %v470_v11 = vadd.f32 %v469_v15, %v1803_v50  ;;  %v189_v50 = vpop.permute.xlu2 %188 }
  0xe8   :  { %v491_v4 = vmax.f32 %v430_v52, 0.0  ;;  %v507_v29 = vmax.f32 %v470_v11, 0.0 }
  0xea   :  { %v557_v2 = vpack.c.bf16 %v508_v23, %v507_v29 }
  0xec   :  { %1001 = vmatpush.bf16.msra.mxu2 %v557_v2 }
  0xed   :  { %v431_v43 = vpop.f32.mrf.mxu0 }
  0xee   :  { %v432_v46 = vadd.f32 %v431_v43, %v1870_v10  ;;  %v490_v10 = vmax.f32 %v427_v57, 0.0  ;;  %v1490_v57 = vld [vmem:[%s2321_s4 + $0x24] sm:$0xf0]  ;;  %v2149_v8 = vpop.permute.xlu2 %663 }
  0xf0   :  { %v492_v62 = vmax.f32 %v432_v46, 0.0  ;;  %v1342_v46 = vld [vmem:[%s2321_s4 + $0x10] sm:$0xf] }
  0xf5   :  { %v434_v44 = vpop.f32.mrf.mxu0 }
  0xf6   :  { %v435_v45 = vadd.f32 %v434_v44, %v1832_v60  ;;  %v422_v60 = vadd.f32 %v421_v38, %v1922_v32  ;;  %v548_v32 = vpack.c.bf16 %v490_v10, %v489_v20  ;;  %v1358_v10 = vld [vmem:[%s2321_s4 + $0x30] sm:$0xf] }
  0xf8   :  { %v493_v53 = vmax.f32 %v435_v45, 0.0  ;;  %v488_v26 = vmax.f32 %v422_v60, 0.0 }
  0xfa   :  { %v547_v30 = vpack.c.bf16 %v488_v26, %v487_v34 }
  0xfd   :  { %v436_v48 = vpop.f32.mrf.mxu0 }
  0xfe   :  { %v437_v51 = vadd.f32 %v436_v48, %v1852_v3  ;;  %v549_v3 = vpack.c.bf16 %v492_v62, %v491_v4  ;;  %v1446_v48 = vld [vmem:[%s2321_s4 + $0xe0] sm:$0xf]  ;;  %v1454_v62 = vld [vmem:[%s2321_s4 + $0xf0] sm:$0xf] }
 0x100   :  { %v494_v56 = vmax.f32 %v437_v51, 0.0 }
 0x102   :  { %v550_v63 = vpack.c.bf16 %v494_v56, %v493_v53  ;;  %v1350_v56 = vld [vmem:[%s2321_s4 + $0x20] sm:$0xf] }
 0x103   :  { %v1351_v4 = vor.u32 %v1490_v57, %v1350_v56  ;;  %v1398_v56 = vld [vmem:[%s2321_s4 + $0x80] sm:$0xf]  ;;  %v1502_v57 = vld [vmem:[%s2321_s4 + $0x84] sm:$0xf0] }
 0x104   :  { %911 = vmatpush.bf16.msra.mxu1 %v550_v63  ;;  %1520 = vmatpush.bf16.msrb.mxu3 %v550_v63  ;;  %v1516_v63 = vld [vmem:[%s2321_s4 + $0xf4] sm:$0xf0] }
 0x105   :  { %v439_v7 = vpop.f32.mrf.mxu0  ;;  %v1455_v5 = vor.u32 %v1516_v63, %v1454_v62  ;;  %v1399_v62 = vor.u32 %v1502_v57, %v1398_v56  ;;  %v1491_v63 = vld [vmem:[%s2321_s4 + $0x34] sm:$0xf] }
 0x106   :  { %v440_v13 = vadd.f32 %v439_v7, %v184_v6  ;;  %v1492_v7 = vld [vmem:[%s2321_s4 + $0x34] sm:$0xf0] }
 0x107   :  { %v1359_v11 = vor.u32 %v1492_v7, %v1358_v10  ;;  %v1493_v7 = vld [vmem:[%s2321_s4 + $0x44] sm:$0xf] }
 0x108   :  { %912 = vmatpush.bf16.msra.mxu1 %v549_v3  ;;  %1521 = vmatpush.bf16.msrb.mxu3 %v549_v3  ;;  %v495_v35 = vmax.f32 %v440_v13, 0.0 }
 0x10c   :  { %913 = vmatpush.bf16.msra.mxu1 %v548_v32  ;;  %1522 = vmatpush.bf16.msrb.mxu3 %v548_v32 }
 0x10d   :  { %v441_v6 = vpop.f32.mrf.mxu0 }
 0x10e   :  { %v442_v55 = vadd.f32 %v441_v6, %v189_v50 }
 0x110   :  { %v496_v19 = vmax.f32 %v442_v55, 0.0  ;;  %914 = vmatpush.bf16.msra.mxu1 %v547_v30  ;;  %1523 = vmatpush.bf16.msrb.mxu3 %v547_v30 }
 0x112   :  { %v1991_v28 = vpack.c.bf16 %v496_v19, %v495_v35 }
 0x114   :  { %915 = vmatpush.bf16.msra.mxu1 %v1963_v21  ;;  %1524 = vmatpush.bf16.msrb.mxu3 %v1963_v21  ;;  %v1438_v21 = vld [vmem:[%s2321_s4 + $0xd0] sm:$0xf] }
 0x115   :  { %v444_v38 = vpop.f32.mrf.mxu0 }
 0x116   :  { %v445_v40 = vadd.f32 %v444_v38, %v1958_v58  ;;  %v1335_v58 = vor.u32 %v1486_v41, %v1334_v39  ;;  %v1336_v38 = vld [vmem:[%s2321_s4 + $0x8] sm:$0xf0]  ;;  %v1511_v39 = vld [vmem:[%s2321_s4 + $0xd4] sm:$0xf] }
 0x118   :  { %916 = vmatpush.bf16.msra.mxu1 %v1953_v54  ;;  %1525 = vmatpush.bf16.msrb.mxu3 %v1953_v54  ;;  %v1512_v54 = vld [vmem:[%s2321_s4 + $0xd4] sm:$0xf0]  ;;  %v497_v44 = vmax.f32 %v445_v40, 0.0  ;;  %v1440_v40 = vld [vmem:[%s2321_s4 + $0xd8] sm:$0xf0] }
 0x119   :  { %v1439_v15 = vor.u32 %v1512_v54, %v1438_v21  ;;  %v1443_v21 = vor.u32 %v1511_v39, %v1440_v40  ;;  %v1382_v54 = vld [vmem:[%s2321_s4 + $0x60] sm:$0xf] }
 0x11c   :  { %917 = vmatpush.bf16.msra.mxu1 %v1965_v22  ;;  %1526 = vmatpush.bf16.msrb.mxu3 %v1965_v22 }
 0x11d   :  { %v446_v42 = vpop.f32.mrf.mxu0 }
 0x11e   :  { %v447_v43 = vadd.f32 %v446_v42, %v1960_v61  ;;  %v1488_v61 = vld [vmem:[%s2321_s4 + $0x14] sm:$0xf0]  ;;  %v1498_v42 = vld [vmem:[%s2321_s4 + $0x64] sm:$0xf0] }
 0x11f   :  { %v1343_v51 = vor.u32 %v1488_v61, %v1342_v46  ;;  %v1500_v46 = vld [vmem:[%s2321_s4 + $0x74] sm:$0xf0] }
 0x120   :  { %v498_v9 = vmax.f32 %v447_v43, 0.0  ;;  %918 = vmatpush.bf16.msra.mxu1 %v1973_v37  ;;  %1527 = vmatpush.bf16.msrb.mxu3 %v1973_v37  ;;  %v1514_v37 = vld [vmem:[%s2321_s4 + $0xe4] sm:$0xf0]  ;;  %v1383_v43 = vor.u32 %v1498_v42, %v1382_v54  ;;  %v1392_v54 = vld [vmem:[%s2321_s4 + $0x78] sm:$0xf0] }
 0x121   :  { %v1447_v52 = vor.u32 %v1514_v37, %v1446_v48  ;;  %v1489_v48 = vld [vmem:[%s2321_s4 + $0x24] sm:$0xf]  ;;  %v1352_v37 = vld [vmem:[%s2321_s4 + $0x28] sm:$0xf0] }
 0x122   :  { %v2015_v22 = vpack.c.bf16 %v498_v9, %v497_v44  ;;  %v1448_v44 = vld [vmem:[%s2321_s4 + $0xe8] sm:$0xf0] }
 0x123   :  { %919 = vmatmul.bf16.vlgmr.msra.gmra.mxu1 %v1335_v58  ;;  %984 = vmatmul.bf16.vlgmr.msrb.gmra.mxu3 %v1439_v15  ;;  %v1487_v58 = vld [vmem:[%s2321_s4 + $0x14] sm:$0xf]  ;;  %v1513_v15 = vld [vmem:[%s2321_s4 + $0xe4] sm:$0xf] }
 0x124   :  { %1528 = vmatpush.bf16.msra.mxu3 %v558_v33 }
 0x125   :  { %v449_v45 = vpop.f32.mrf.mxu0 }
 0x128   :  { %1529 = vmatpush.bf16.msra.mxu3 %v557_v2 }
 0x12d   :  { %v451_v49 = vpop.f32.mrf.mxu0 }
 0x12e   :  { %v452_v6 = vadd.f32 %v451_v49, %v1948_v47  ;;  %v1496_v47 = vld [vmem:[%s2321_s4 + $0x54] sm:$0xf0]  ;;  %v1515_v49 = vld [vmem:[%s2321_s4 + $0xf4] sm:$0xf] }
 0x133   :  { %924 = vmatmul.bf16.gmra.mxu1 %v1343_v51  ;;  %989 = vmatmul.bf16.gmra.mxu3 %v1447_v52  ;;  %v1456_v51 = vld [vmem:[%s2321_s4 + $0xf8] sm:$0xf0]  ;;  %v1355_v52 = vor.u32 %v1489_v48, %v1352_v37  ;;  %v1400_v48 = vld [vmem:[%s2321_s4 + $0x88] sm:$0xf0] }
 0x135   :  { %v454_v53 = vpop.f32.mrf.mxu0 }
 0x136   :  { %v455_v34 = vadd.f32 %v454_v53, %v1920_v31  ;;  %v1374_v31 = vld [vmem:[%s2321_s4 + $0x50] sm:$0xf]  ;;  %v1459_v53 = vor.u32 %v1515_v49, %v1456_v51 }
 0x137   :  { %v1375_v19 = vor.u32 %v1496_v47, %v1374_v31 }
 0x138   :  { %v501_v30 = vmax.f32 %v455_v34, 0.0  ;;  %v1508_v34 = vld [vmem:[%s2321_s4 + $0xb4] sm:$0xf0] }
 0x13d   :  { %v456_v0 = vpop.f32.mrf.mxu0 }
 0x143   :  { %929 = vmatmul.bf16.gmra.mxu1 %v1351_v4  ;;  %994 = vmatmul.bf16.gmra.mxu3 %v1455_v5  ;;  %v1406_v5 = vld [vmem:[%s2321_s4 + $0x90] sm:$0xf] }
 0x145   :  { %v459_v60 = vpop.f32.mrf.mxu0 }
 0x146   :  { %v460_v26 = vadd.f32 %v459_v60, %v1904_v24  ;;  %v500_v24 = vmax.f32 %v452_v6, 0.0  ;;  %v1504_v60 = vld [vmem:[%s2321_s4 + $0x94] sm:$0xf0] }
 0x147   :  { %v1407_v10 = vor.u32 %v1504_v60, %v1406_v5 }
 0x148   :  { %v503_v50 = vmax.f32 %v460_v26, 0.0 }
 0x14d   :  { %v461_v3 = vpop.f32.mrf.mxu0 }
 0x14e   :  { %v462_v59 = vadd.f32 %v461_v3, %v1906_v25  ;;  %v1368_v3 = vld [vmem:[%s2321_s4 + $0x48] sm:$0xf0] }
 0x150   :  { %v504_v23 = vmax.f32 %v462_v59, 0.0 }
 0x152   :  { %v555_v55 = vpack.c.bf16 %v504_v23, %v503_v50 }
 0x153   :  { %934 = vmatmul.bf16.gmra.mxu1 %v1359_v11  ;;  %v1371_v11 = vor.u32 %v1493_v7, %v1368_v3  ;;  %v1503_v7 = vld [vmem:[%s2321_s4 + $0x94] sm:$0xf]  ;;  %v1408_v3 = vld [vmem:[%s2321_s4 + $0x98] sm:$0xf0] }
 0x155   :  { %v464_v12 = vpop.f32.mrf.mxu0 }
 0x156   :  { %v465_v13 = vadd.f32 %v464_v12, %v1848_v1  ;;  %v457_v1 = vadd.f32 %v456_v0, %v1912_v27  ;;  %v1360_v0 = vld [vmem:[%s2321_s4 + $0x38] sm:$0xf0]  ;;  %v1414_v12 = vld [vmem:[%s2321_s4 + $0xa0] sm:$0xf] }
 0x157   :  { %v1363_v4 = vor.u32 %v1491_v63, %v1360_v0 }
 0x158   :  { %v505_v32 = vmax.f32 %v465_v13, 0.0  ;;  %v502_v25 = vmax.f32 %v457_v1, 0.0  ;;  %v1506_v13 = vld [vmem:[%s2321_s4 + $0xa4] sm:$0xf0]  ;;  %v2161_v1 = vpop.permute.xlu2 %658 }
 0x159   :  { %v1415_v14 = vor.u32 %v1506_v13, %v1414_v12 }
 0x15a   :  { %v554_v2 = vpack.c.bf16 %v502_v25, %v501_v30 }
 0x15d   :  { %v466_v18 = vpop.f32.mrf.mxu0 }
 0x15e   :  { %v467_v20 = vadd.f32 %v466_v18, %v1886_v16  ;;  %v450_v16 = vadd.f32 %v449_v45, %v1933_v36  ;;  %v1485_v36 = vld [vmem:[%s2321_s4 + $0x4] sm:$0xf]  ;;  %v1390_v45 = vld [vmem:[%s2321_s4 + $0x70] sm:$0xf]  ;;  %v2151_v18 = vpop.permute.xlu1 %653 }
 0x15f   :  { %v1339_v41 = vor.u32 %v1485_v36, %v1336_v38  ;;  %v1391_v61 = vor.u32 %v1500_v46, %v1390_v45  ;;  %v1430_v36 = vld [vmem:[%s2321_s4 + $0xc0] sm:$0xf]  ;;  %v1510_v38 = vld [vmem:[%s2321_s4 + $0xc4] sm:$0xf0] }
 0x160   :  { %v506_v29 = vmax.f32 %v467_v20, 0.0  ;;  %v499_v27 = vmax.f32 %v450_v16, 0.0  ;;  %v1495_v20 = vld [vmem:[%s2321_s4 + $0x54] sm:$0xf]  ;;  %v2173_v16 = vpop.permute.xlu2 %633  ;;  %v1431_v40 = vor.u32 %v1510_v38, %v1430_v36 }
 0x162   :  { %v556_v33 = vpack.c.bf16 %v506_v29, %v505_v32  ;;  %v553_v35 = vpack.c.bf16 %v500_v24, %v499_v27  ;;  %v2159_v29 = vpop.permute.xlu0 %668  ;;  %v1497_v24 = vld [vmem:[%s2321_s4 + $0x64] sm:$0xf] }
 0x163   :  { %939 = vmatmul.bf16.gmra.mxu1 %v1367_v17  ;;  %v1376_v17 = vld [vmem:[%s2321_s4 + $0x58] sm:$0xf0] }
 0x164   :  { %1002 = vmatpush.bf16.msra.mxu2 %v556_v33  ;;  %1530 = vmatpush.bf16.msra.mxu3 %v556_v33  ;;  %v1379_v32 = vor.u32 %v1495_v20, %v1376_v17  ;;  %v1422_v33 = vld [vmem:[%s2321_s4 + $0xb0] sm:$0xf] }
 0x165   :  { %v1423_v6 = vor.u32 %v1508_v34, %v1422_v33 }
 0x166   :  { %v2163_v23 = vpop.permute.xlu1 %648 }
 0x168   :  { %1003 = vmatpush.bf16.msra.mxu2 %v555_v55  ;;  %1531 = vmatpush.bf16.msra.mxu3 %v555_v55 }
 0x16a   :  { %v2171_v55 = vpop.permute.xlu0 %643 }
 0x16c   :  { %1004 = vmatpush.bf16.msra.mxu2 %v554_v2  ;;  %1532 = vmatpush.bf16.msra.mxu3 %v554_v2  ;;  %v1384_v2 = vld [vmem:[%s2321_s4 + $0x68] sm:$0xf0] }
 0x16d   :  { %v1387_v27 = vor.u32 %v1497_v24, %v1384_v2 }
 0x16e   :  { %v2175_v30 = vpop.permute.xlu1 %623 }
 0x170   :  { %1005 = vmatpush.bf16.msra.mxu2 %v553_v35  ;;  %1533 = vmatpush.bf16.msra.mxu3 %v553_v35 }
 0x172   :  { %v2185_v35 = vpop.permute.xlu0 %638 }
 0x173   :  { %944 = vmatmul.bf16.gmra.mxu1 %v1375_v19  ;;  %v2187_v19 = vpop.permute.xlu2 %628 }
 0x174   :  { %1006 = vmatpush.bf16.msra.mxu2 %v2015_v22  ;;  %1534 = vmatpush.bf16.msra.mxu3 %v2015_v22  ;;  %v1451_v22 = vor.u32 %v1513_v15, %v1448_v44 }
 0x176   :  { %v2195_v39 = vpop.permute.xlu1 %748 }
 0x178   :  { %1007 = vmatpush.bf16.msra.mxu2 %v1991_v28  ;;  %1535 = vmatpush.bf16.msra.mxu3 %v1991_v28  ;;  %v1344_v28 = vld [vmem:[%s2321_s4 + $0x18] sm:$0xf0] }
 0x179   :  { %v1347_v9 = vor.u32 %v1487_v58, %v1344_v28 }
 0x17b   :  { %1008 = vmatmul.bf16.vlgmr.msra.gmra.mxu2 %v1339_v41  ;;  %1073 = vmatmul.bf16.vlgmr.msra.gmra.mxu3 %v1443_v21  ;;  %v1499_v21 = vld [vmem:[%s2321_s4 + $0x74] sm:$0xf]  ;;  %v2205_v58 = vpop.permute.xlu2 %613 }
 0x17c   :  { %v1395_v28 = vor.u32 %v1499_v21, %v1392_v54  ;;  %v1505_v21 = vld [vmem:[%s2321_s4 + $0xa4] sm:$0xf]  ;;  %v1416_v54 = vld [vmem:[%s2321_s4 + $0xa8] sm:$0xf0] }
 0x17e   :  { %v734_v15 = vpop.permute.xlu1 %733 }
 0x183   :  { %949 = vmatmul.bf16.gmra.mxu1 %v1383_v43  ;;  %v2203_v43 = vpop.permute.xlu0 %743  ;;  %v739_v45 = vpop.permute.xlu2 %738 }
 0x186   :  { %v609_v46 = vpop.permute.xlu1 %608 }
 0x18b   :  { %1013 = vmatmul.bf16.gmra.mxu2 %v1347_v9  ;;  %1078 = vmatmul.bf16.gmra.mxu3 %v1451_v22  ;;  %v2209_v22 = vpop.permute.xlu0 %618 }
 0x18e   :  { %v594_v56 = vpop.permute.xlu1 %593 }
 0x193   :  { %954 = vmatmul.bf16.gmra.mxu1 %v1391_v61  ;;  %v1501_v61 = vld [vmem:[%s2321_s4 + $0x84] sm:$0xf] }
 0x194   :  { %v1403_v49 = vor.u32 %v1501_v61, %v1400_v48 }
 0x19b   :  { %1018 = vmatmul.bf16.gmra.mxu2 %v1355_v52  ;;  %1083 = vmatmul.bf16.gmra.mxu3 %v1459_v53  ;;  %v604_v52 = vpop.permute.xlu0 %603  ;;  %v724_v53 = vpop.permute.xlu2 %723 }
 0x1a0   :  { %v920_v26 = vpop.f32.mrf.mxu1 }
 0x1a1   :  { %v921_v57 = vadd.f32 %v920_v26, %v594_v56  ;;  %v1419_v56 = vor.u32 %v1505_v21, %v1416_v54 }
 0x1a3   :  { %959 = vmatmul.bf16.gmra.mxu1 %v1399_v62  ;;  %v729_v60 = vpop.permute.xlu0 %728 }
 0x1a6   :  { %v985_v59 = vpop.f32.mrf.mxu3 }
 0x1a8   :  { %v922_v25 = vpop.f32.mrf.mxu1 }
 0x1ab   :  { %1023 = vmatmul.bf16.gmra.mxu2 %v1363_v4  ;;  %v986_v4 = vadd.f32 %v985_v59, %v724_v53 }
 0x1ae   :  { %v987_v50 = vpop.f32.mrf.mxu3 }
 0x1af   :  { %v988_v12 = vadd.f32 %v987_v50, %v729_v60 }
 0x1b0   :  { %v925_v47 = vpop.f32.mrf.mxu1 }
 0x1b3   :  { %964 = vmatmul.bf16.gmra.mxu1 %v1407_v10  ;;  %v599_v10 = vpop.permute.xlu2 %598 }
 0x1b6   :  { %v2183_v31 = vpop.f32.mrf.mxu3 }
 0x1b8   :  { %v927_v42 = vpop.f32.mrf.mxu1 }
 0x1bb   :  { %1028 = vmatmul.bf16.gmra.mxu2 %v1371_v11  ;;  %v923_v11 = vadd.f32 %v922_v25, %v599_v10  ;;  %v1424_v10 = vld [vmem:[%s2321_s4 + $0xb8] sm:$0xf0] }
 0x1be   :  { %v992_v41 = vpop.f32.mrf.mxu3 }
 0x1bf   :  { %v993_v61 = vadd.f32 %v992_v41, %v739_v45 }
 0x1c0   :  { %v930_v9 = vpop.f32.mrf.mxu1 }
 0x1c1   :  { %v931_v60 = vadd.f32 %v930_v9, %v2205_v58 }
 0x1c3   :  { %969 = vmatmul.bf16.gmra.mxu1 %v1415_v14 }
 0x1c6   :  { %v2207_v44 = vpop.f32.mrf.mxu3 }
 0x1c8   :  { %v932_v51 = vpop.f32.mrf.mxu1 }
 0x1cb   :  { %1033 = vmatmul.bf16.gmra.mxu2 %v1379_v32  ;;  %v1411_v32 = vor.u32 %v1503_v7, %v1408_v3  ;;  %v933_v7 = vadd.f32 %v932_v51, %v2209_v22  ;;  %v1432_v22 = vld [vmem:[%s2321_s4 + $0xc8] sm:$0xf0] }
 0x1ce   :  { %v2217_v37 = vpop.f32.mrf.mxu3 }
 0x1d0   :  { %v935_v5 = vpop.f32.mrf.mxu1 }
 0x1d3   :  { %974 = vmatmul.bf16.gmra.mxu1 %v1423_v6 }
 0x1d8   :  { %v937_v36 = vpop.f32.mrf.mxu1 }
 0x1d9   :  { %v938_v51 = vadd.f32 %v937_v36, %v2187_v19 }
 0x1db   :  { %1038 = vmatmul.bf16.gmra.mxu2 %v1387_v27  ;;  %v926_v27 = vadd.f32 %v925_v47, %v604_v52 }
 0x1e3   :  { %979 = vmatmul.bf16.gmra.mxu1 %v1431_v40  ;;  %v991_v40 = vadd.f32 %v2183_v31, %v734_v15 }
 0x1eb   :  { %1043 = vmatmul.bf16.gmra.mxu2 %v1395_v28  ;;  %v928_v28 = vadd.f32 %v927_v42, %v609_v46  ;;  %v1507_v46 = vld [vmem:[%s2321_s4 + $0xb4] sm:$0xf] }
 0x1fb   :  { %1048 = vmatmul.bf16.gmra.mxu2 %v1403_v49 }
 0x1fe   :  { %v1009_v62 = vpop.f32.mrf.mxu2  ;;  %v1074_v63 = vpop.f32.mrf.mxu3 }
 0x1ff   :  { %v1010_v0 = vadd.f32 %v1009_v62, %v921_v57  ;;  %v1075_v13 = vadd.f32 %v1074_v63, %v986_v4  ;;  %v940_v57 = vpop.f32.mrf.mxu1 }
 0x201   :  { %v1089_v59 = vmax.f32 %v1010_v0, 0.0  ;;  %v1115_v33 = vmax.f32 %v1075_v13, 0.0 }
 0x206   :  { %v1011_v14 = vpop.f32.mrf.mxu2  ;;  %v1076_v20 = vpop.f32.mrf.mxu3 }
 0x207   :  { %v1012_v17 = vadd.f32 %v1011_v14, %v923_v11  ;;  %v1077_v26 = vadd.f32 %v1076_v20, %v988_v12  ;;  %v2241_v45 = vpop.f32.mrf.mxu1  ;;  %v1427_v12 = vor.u32 %v1507_v46, %v1424_v10  ;;  %v936_v20 = vadd.f32 %v935_v5, %v2175_v30 }
 0x208   :  { %v941_v30 = vadd.f32 %v940_v57, %v2173_v16 }
 0x209   :  { %v1090_v34 = vmax.f32 %v1012_v17, 0.0  ;;  %v1116_v6 = vmax.f32 %v1077_v26, 0.0 }
 0x20b   :  { %v2225_v24 = vpack.c.bf16 %v1116_v6, %v1115_v33  ;;  %1053 = vmatmul.bf16.gmra.mxu2 %v1411_v32  ;;  %v2227_v2 = vpack.c.bf16 %v1090_v34, %v1089_v59  ;;  %v1509_v32 = vld [vmem:[%s2321_s4 + $0xc4] sm:$0xf] }
 0x20c   :  { %v1435_v6 = vor.u32 %v1509_v32, %v1432_v22 }
 0x20e   :  { %v1014_v38 = vpop.f32.mrf.mxu2  ;;  %v1079_v25 = vpop.f32.mrf.mxu3 }
 0x20f   :  { %v1015_v50 = vadd.f32 %v1014_v38, %v926_v27  ;;  %v1080_v48 = vadd.f32 %v1079_v25, %v991_v40  ;;  %v945_v9 = vpop.f32.mrf.mxu1 }
 0x211   :  { %v1091_v62 = vmax.f32 %v1015_v50, 0.0  ;;  %v1117_v63 = vmax.f32 %v1080_v48, 0.0 }
 0x216   :  { %v1016_v49 = vpop.f32.mrf.mxu2  ;;  %v1081_v53 = vpop.f32.mrf.mxu3 }
 0x217   :  { %v1017_v47 = vadd.f32 %v1016_v49, %v928_v28  ;;  %v1082_v52 = vadd.f32 %v1081_v53, %v993_v61  ;;  %v947_v59 = vpop.f32.mrf.mxu1  ;;  %v2263_v49 = vpop.permute.xlu0 %713 }
 0x219   :  { %v1092_v31 = vmax.f32 %v1017_v47, 0.0  ;;  %v1118_v15 = vmax.f32 %v1082_v52, 0.0  ;;  %v2265_v47 = vpop.permute.xlu2 %703 }
 0x21b   :  { %v2236_v0 = vpack.c.bf16 %v1092_v31, %v1091_v62  ;;  %v2238_v4 = vpack.c.bf16 %v1118_v15, %v1117_v63  ;;  %1058 = vmatmul.bf16.gmra.mxu2 %v1419_v56 }
 0x21e   :  { %v1019_v42 = vpop.f32.mrf.mxu2 }
 0x21f   :  { %v1020_v41 = vadd.f32 %v1019_v42, %v931_v60  ;;  %v950_v40 = vpop.f32.mrf.mxu1  ;;  %v2267_v62 = vpop.permute.xlu0 %708 }
 0x221   :  { %v1093_v13 = vmax.f32 %v1020_v41, 0.0  ;;  %v2269_v16 = vpop.permute.xlu2 %698  ;;  %v951_v41 = vadd.f32 %v950_v40, %v2151_v18 }
 0x226   :  { %v1021_v3 = vpop.f32.mrf.mxu2 }
 0x227   :  { %v1022_v11 = vadd.f32 %v1021_v3, %v933_v7  ;;  %v952_v54 = vpop.f32.mrf.mxu1  ;;  %v948_v7 = vadd.f32 %v947_v59, %v2163_v23 }
 0x228   :  { %v953_v31 = vadd.f32 %v952_v54, %v2161_v1 }
 0x229   :  { %v1094_v14 = vmax.f32 %v1022_v11, 0.0  ;;  %v674_v1 = vpop.permute.xlu2 %673 }
 0x22b   :  { %v2250_v58 = vpack.c.bf16 %v1094_v14, %v1093_v13  ;;  %1063 = vmatmul.bf16.gmra.mxu2 %v1427_v12  ;;  %v684_v13 = vpop.permute.xlu0 %683  ;;  %v946_v14 = vadd.f32 %v945_v9, %v2171_v55  ;;  %v1084_v55 = vpop.f32.mrf.mxu3 }
 0x22e   :  { %v1024_v17 = vpop.f32.mrf.mxu2 }
 0x22f   :  { %v1025_v26 = vadd.f32 %v1024_v17, %v936_v20  ;;  %v955_v61 = vpop.f32.mrf.mxu1 }
 0x230   :  { %v956_v63 = vadd.f32 %v955_v61, %v2149_v8 }
 0x231   :  { %v1095_v27 = vmax.f32 %v1025_v26, 0.0 }
 0x236   :  { %v1026_v33 = vpop.f32.mrf.mxu2 }
 0x237   :  { %v1027_v34 = vadd.f32 %v1026_v33, %v938_v51  ;;  %v957_v19 = vpop.f32.mrf.mxu1 }
 0x238   :  { %v958_v15 = vadd.f32 %v957_v19, %v2159_v29  ;;  %v943_v29 = vadd.f32 %v2241_v45, %v2185_v35 }
 0x239   :  { %v1096_v38 = vmax.f32 %v1027_v34, 0.0 }
 0x23b   :  { %v2260_v25 = vpack.c.bf16 %v1096_v38, %v1095_v27  ;;  %1068 = vmatmul.bf16.gmra.mxu2 %v1435_v6  ;;  %v679_v38 = vpop.permute.xlu0 %678 }
 0x23e   :  { %v1029_v5 = vpop.f32.mrf.mxu2 }
 0x23f   :  { %v1030_v50 = vadd.f32 %v1029_v5, %v941_v30  ;;  %v960_v52 = vpop.f32.mrf.mxu1 }
 0x240   :  { %v961_v32 = vadd.f32 %v960_v52, %v674_v1 }
 0x241   :  { %v1097_v5 = vmax.f32 %v1030_v50, 0.0  ;;  %v996_v50 = vadd.f32 %v2207_v44, %v2203_v43 }
 0x246   :  { %v1031_v21 = vpop.f32.mrf.mxu2 }
 0x247   :  { %v962_v57 = vpop.f32.mrf.mxu1  ;;  %v1032_v23 = vadd.f32 %v1031_v21, %v943_v29 }
 0x248   :  { %v963_v30 = vadd.f32 %v962_v57, %v679_v38 }
 0x249   :  { %v1098_v9 = vmax.f32 %v1032_v23, 0.0 }
 0x24b   :  { %v1127_v45 = vpack.c.bf16 %v1098_v9, %v1097_v5  ;;  %v1517_v5 = vld [vmem:[%s2323_s6 + $0x4] sm:$0xf] }
 0x24e   :  { %v1034_v28 = vpop.f32.mrf.mxu2 }
 0x24f   :  { %v965_v26 = vpop.f32.mrf.mxu1  ;;  %v1035_v18 = vadd.f32 %v1034_v28, %v946_v14 }
 0x250   :  { %v966_v19 = vadd.f32 %v965_v26, %v684_v13 }
 0x251   :  { %v1099_v6 = vmax.f32 %v1035_v18, 0.0 }
 0x256   :  { %v1036_v48 = vpop.f32.mrf.mxu2 }
 0x257   :  { %v1037_v20 = vadd.f32 %v1036_v48, %v948_v7  ;;  %v967_v40 = vpop.f32.mrf.mxu1  ;;  %v1086_v48 = vpop.f32.mrf.mxu3 }
 0x258   :  { %v719_v7 = vpop.permute.xlu1 %718 }
 0x259   :  { %v1100_v59 = vmax.f32 %v1037_v20, 0.0 }
 0x25b   :  { %v1128_v27 = vpack.c.bf16 %v1100_v59, %v1099_v6 }
 0x25e   :  { %v1039_v36 = vpop.f32.mrf.mxu2 }
 0x25f   :  { %v1040_v3 = vadd.f32 %v1039_v36, %v951_v41  ;;  %v998_v36 = vadd.f32 %v2217_v37, %v2195_v39  ;;  %v970_v57 = vpop.f32.mrf.mxu1  ;;  %v1518_v39 = vld [vmem:[%s2323_s6 + $0x4] sm:$0xf0] }
 0x261   :  { %v1101_v22 = vmax.f32 %v1040_v3, 0.0 }
 0x266   :  { %v1041_v53 = vpop.f32.mrf.mxu2 }
 0x267   :  { %v1042_v46 = vadd.f32 %v1041_v53, %v953_v31  ;;  %v972_v44 = vpop.f32.mrf.mxu1 }
 0x268   :  { %v973_v26 = vadd.f32 %v972_v44, %v2269_v16 }
 0x269   :  { %v1102_v8 = vmax.f32 %v1042_v46, 0.0 }
 0x26b   :  { %v1129_v33 = vpack.c.bf16 %v1102_v8, %v1101_v22 }
 0x26e   :  { %v1044_v56 = vpop.f32.mrf.mxu2 }
 0x26f   :  { %v1045_v60 = vadd.f32 %v1044_v56, %v956_v63  ;;  %v1087_v56 = vadd.f32 %v1086_v48, %v998_v36  ;;  %v1085_v63 = vadd.f32 %v1084_v55, %v996_v50 }
 0x271   :  { %v1103_v11 = vmax.f32 %v1045_v60, 0.0  ;;  %v1120_v31 = vmax.f32 %v1087_v56, 0.0  ;;  %v1119_v37 = vmax.f32 %v1085_v63, 0.0  ;;  %v1144_v56 = vpop.permute.xlu2 %1143 }
 0x273   :  { %v1138_v60 = vpack.c.bf16 %v1120_v31, %v1119_v37  ;;  %v1193_v31 = vld [vmem:[%s2318_s1] sm:$0xff]  ;;  %s1602_s1 = smov [#allocation4]  }
 0x274   :  { %v1201_v44 = vmul.f32 -0.5, %v1193_v31  ;;  %s1236_s8 = sshll.u32 %s1602_s1, 4  ;;  %s1237_s8 = int_to_ptr.vmem [resolvable:$true] %s1236_s8 }
 0x276   :  { %v1046_v42 = vpop.f32.mrf.mxu2 }
 0x277   :  { %v1047_v10 = vadd.f32 %v1046_v42, %v958_v15 }
 0x279   :  { %v1104_v12 = vmax.f32 %v1047_v10, 0.0 }
 0x27b   :  { %v1130_v17 = vpack.c.bf16 %v1104_v12, %v1103_v11  ;;  %v694_v12 = vpop.permute.xlu1 %693 }
 0x27c   :  { %v971_v22 = vadd.f32 %v970_v57, %v694_v12 }
 0x27d   :  { %1161 = vmatpush.bf16.msrb.mxu3 %v1130_v17 }
 0x27e   :  { %v1049_v51 = vpop.f32.mrf.mxu2 }
 0x27f   :  { %v1050_v34 = vadd.f32 %v1049_v51, %v961_v32 }
 0x281   :  { %1162 = vmatpush.bf16.msrb.mxu3 %v1129_v33  ;;  %v1105_v28 = vmax.f32 %v1050_v34, 0.0 }
 0x283   :  { %v689_v33 = vpop.permute.xlu1 %688 }
 0x285   :  { %1163 = vmatpush.bf16.msrb.mxu3 %v1128_v27 }
 0x286   :  { %v1051_v35 = vpop.f32.mrf.mxu2 }
 0x287   :  { %v1052_v54 = vadd.f32 %v1051_v35, %v963_v30 }
 0x289   :  { %v1106_v61 = vmax.f32 %v1052_v54, 0.0  ;;  %1164 = vmatpush.bf16.msrb.mxu3 %v1127_v45 }
 0x28b   :  { %v2279_v21 = vpack.c.bf16 %v1106_v61, %v1105_v28  ;;  %v1149_v61 = vpop.permute.xlu1 %1148 }
 0x28d   :  { %1165 = vmatpush.bf16.msrb.mxu3 %v2260_v25  ;;  %v1462_v25 = vld [vmem:[%s2323_s6] sm:$0xf] }
 0x28e   :  { %v1054_v53 = vpop.f32.mrf.mxu2  ;;  %v1463_v43 = vor.u32 %v1518_v39, %v1462_v25 }
 0x28f   :  { %v1055_v52 = vadd.f32 %v1054_v53, %v966_v19 }
 0x291   :  { %1166 = vmatpush.bf16.msrb.mxu3 %v2250_v58  ;;  %v1107_v16 = vmax.f32 %v1055_v52, 0.0 }
 0x295   :  { %1167 = vmatpush.bf16.msrb.mxu3 %v2236_v0  ;;  %v975_v0 = vpop.f32.mrf.mxu1 }
 0x296   :  { %v1056_v15 = vpop.f32.mrf.mxu2 }
 0x299   :  { %1168 = vmatpush.bf16.msrb.mxu3 %v2227_v2 }
 0x29c   :  { %1169 = vmatmul.bf16.vlgmr.msrb.gmra.mxu3 %v1463_v43 }
 0x29d   :  { %1175 = vmatpush.bf16.msra.mxu3 %v1138_v60  ;;  %v977_v41 = vpop.f32.mrf.mxu1 }
 0x29e   :  { %v1059_v58 = vpop.f32.mrf.mxu2  ;;  %v978_v14 = vadd.f32 %v977_v41, %v2267_v62 }
 0x29f   :  { %v1060_v34 = vadd.f32 %v1059_v58, %v971_v22  ;;  %v1202_v58 = vmul.f32 %v1201_v44, %v1193_v31 }
 0x2a1   :  { %1176 = vmatpush.bf16.msra.mxu3 %v2238_v4  ;;  %v976_v4 = vadd.f32 %v975_v0, %v2265_v47  ;;  %v1109_v47 = vmax.f32 %v1060_v34, 0.0 }
 0x2a5   :  { %1177 = vmatpush.bf16.msra.mxu3 %v2225_v24  ;;  %v980_v3 = vpop.f32.mrf.mxu1 }
 0x2a6   :  { %v1061_v42 = vpop.f32.mrf.mxu2  ;;  %v981_v2 = vadd.f32 %v980_v3, %v2263_v49  ;;  %v968_v49 = vadd.f32 %v967_v40, %v689_v33  ;;  %v1464_v40 = vld [vmem:[%s2323_s6 + $0x8] sm:$0xf0] }
 0x2a7   :  { %v1062_v51 = vadd.f32 %v1061_v42, %v973_v26  ;;  %v1467_v35 = vor.u32 %v1517_v5, %v1464_v40 }
 0x2a8   :  { %v1057_v6 = vadd.f32 %v1056_v15, %v968_v49 }
 0x2a9   :  { %v1110_v55 = vmax.f32 %v1062_v51, 0.0 }
 0x2aa   :  { %v1108_v27 = vmax.f32 %v1057_v6, 0.0 }
 0x2ab   :  { %v1133_v38 = vpack.c.bf16 %v1110_v55, %v1109_v47 }
 0x2ac   :  { %v1132_v30 = vpack.c.bf16 %v1108_v27, %v1107_v16 }
 0x2ad   :  { %v982_v13 = vpop.f32.mrf.mxu1 }
 0x2ae   :  { %v1064_v46 = vpop.f32.mrf.mxu2  ;;  %v983_v20 = vadd.f32 %v982_v13, %v719_v7 }
 0x2af   :  { %v1065_v29 = vadd.f32 %v1064_v46, %v976_v4 }
 0x2b1   :  { %v1111_v62 = vmax.f32 %v1065_v29, 0.0 }
 0x2b6   :  { %v1066_v10 = vpop.f32.mrf.mxu2 }
 0x2b7   :  { %v1067_v24 = vadd.f32 %v1066_v10, %v978_v14 }
 0x2b9   :  { %v1112_v23 = vmax.f32 %v1067_v24, 0.0 }
 0x2bb   :  { %v1134_v9 = vpack.c.bf16 %v1112_v23, %v1111_v62 }
 0x2be   :  { %v1069_v11 = vpop.f32.mrf.mxu2 }
 0x2bf   :  { %v1070_v8 = vadd.f32 %v1069_v11, %v981_v2 }
 0x2c1   :  { %v1113_v32 = vmax.f32 %v1070_v8, 0.0 }
 0x2c6   :  { %v1071_v17 = vpop.f32.mrf.mxu2 }
 0x2c7   :  { %v1072_v1 = vadd.f32 %v1071_v17, %v983_v20 }
 0x2c9   :  { %v1114_v18 = vmax.f32 %v1072_v1, 0.0 }
 0x2cb   :  { %v1135_v59 = vpack.c.bf16 %v1114_v18, %v1113_v32 }
 0x2cd   :  { %1178 = vmatpush.bf16.msra.mxu3 %v1135_v59 }
 0x2d1   :  { %1179 = vmatpush.bf16.msra.mxu3 %v1134_v9 }
 0x2d5   :  { %1180 = vmatpush.bf16.msra.mxu3 %v1133_v38 }
 0x2d9   :  { %1181 = vmatpush.bf16.msra.mxu3 %v1132_v30 }
 0x2dd   :  { %1182 = vmatpush.bf16.msra.mxu3 %v2279_v21 }
 0x2e0   :  { %1183 = vmatmul.bf16.vlgmr.msra.gmra.mxu3 %v1467_v35 }
 0x31f   :  { %v1170_v45 = vpop.f32.mrf.mxu3 }
 0x320   :  { %v1171_v57 = vadd.f32 %v1170_v45, %v1144_v56 }
 0x327   :  { %v1172_v54 = vpop.f32.mrf.mxu3 }
 0x328   :  { %v1173_v48 = vadd.f32 %v1172_v54, %v1149_v61 }
 0x363   :  { %v1184_v28 = vpop.f32.mrf.mxu3 }
 0x364   :  { %v1185_v21 = vadd.f32 %v1184_v28, %v1171_v57 }
 0x36b   :  { %v1186_v19 = vpop.f32.mrf.mxu3 }
 0x36c   :  { %v1187_v36 = vadd.f32 %v1186_v19, %v1173_v48 }
 0x36e   :  { %v1189_v53 = vmax.f32 %v1187_v36, -20.0 }
 0x370   :  { %v1190_v52 = vmin.f32 %v1189_v53, 2.0 }
 0x372   :  { %v1191_v50 = vmul.f32 1.442695, %v1190_v52  ;;  %v1203_v42 = vsub.f32 %v1202_v58, %v1190_v52 }
 0x374   :  { %1542 = vpow2.f32 %v1191_v50 }
 0x37a   :  { %v1543_v63 = vpop.eup %1542 }
 0x37b   :  { %v1194_v25 = vmul.f32 %v1543_v63, %v1193_v31 }
 0x37d   :  { %v1195_v39 = vadd.f32 %v1194_v25, %v1185_v21 }
 0x37f   :  { %1544 = vtanh.f32 %v1195_v39 }
 0x385   :  { %v1545_v37 = vpop.eup %1544 }
 0x386   :  { %v1205_v15 = vmul.f32 %v1545_v37, %v1545_v37  ;;  %1197 = vst [vmem:[#allocation2] sm:$0xff] %v1545_v37 }
 0x387   :  { %1230 = dma.vmem_to_hbm [thread:$0]  %s1226_s0, 128, %s1228_s25, [#allocation3]  }
 0x388   :  { %v1206_v60 = vsub.f32 1.0, %v1205_v15 }
 0x38a   :  { %v1207_v43 = vadd.f32 1e-06, %v1206_v60 }
 0x38c   :  { %1546 = vlog2.f32 %v1207_v43 }
 0x392   :  { %v1547_v0 = vpop.eup %1546 }
 0x393   :  { %v1209_v41 = vmul.f32 0.6931472, %v1547_v0 }
 0x395   :  { %v1211_v46 = vsub.f32 %v1203_v42, %v1209_v41 }
 0x397   :  { %v1212_v10 = vrot.slane %v1211_v46, 4 }
 0x399   :  { %v1213_v7 = vadd.f32 %v1212_v10, %v1211_v46 }
 0x39b   :  { %v1214_v3 = vrot.slane %v1213_v7, 2 }
 0x39d   :  { %v1215_v11 = vadd.f32 %v1214_v3, %v1213_v7 }
 0x39f   :  { %v1216_v12 = vrot.slane %v1215_v11, 1 }
 0x3a1   :  { %v1217_v13 = vadd.f32 %v1216_v12, %v1215_v11 }
 0x3a3   :  { %v1468_v2 = vadd.f32 -7.351508, %v1217_v13 }
 0x3a5   :  { %1219 = vst [vmem:[#allocation4] sm:$0x1] %v1468_v2 }
 0x3a6   :  { %1241 = dma.vmem_to_hbm [thread:$0]  %s1237_s8, 16, %s1239_s3, [#allocation5]  }
 0x3a7   :  { %1596 = dma.done.wait [#allocation3], 128  }
 0x3a8   :  { %1597 = vsyncadd [#allocation3], 4294967168 }
 0x3a9   :  { %1598 = dma.done.wait [#allocation5], 16  }
 0x3aa   :  { %1599 = vsyncadd [#allocation5], 4294967280 }
 0x3ab   :  { %1250 = vsyncpa [#allocation3], 1 }
 0x3ac   :  { %1251 = vsyncpa [#allocation5], 1 }

</bundles_post_ra>
